<compile_context>
chip_gen: v7x
topology: tpu7x:2x2x1
jax: 0.10.0
libtpu: 0.0.40
codegen_flags: <defaults>
</compile_context>

<pallas_src>
import functools
import math

import jax
import jax.numpy as jnp
from jax.experimental import pallas as pl
from jax.experimental.pallas import tpu as pltpu


def _round_up(x, m):
    return (x + m - 1) // m * m


def _pick_div(n, cands):
    for c in cands:
        if n % c == 0:
            return c
    return None


def _row_tile(m, cap=256):
    """Row tiling for elementwise kernels: full block if small, else divisor."""
    if m <= cap:
        return m, m
    t = _pick_div(m, (256, 128, 64, 32, 16, 8))
    if t is not None:
        return m, t
    mp = _round_up(m, cap)
    return mp, cap


def _mm_tiles(M, K, N):
    """Matmul tiling: (Mp, Kp, Np, tm, tk, tn)."""
    # M (rows of A / output): multiple of 16 for bf16, or full dim.
    if M <= 256:
        Mp, tm = M, M
    else:
        tm = _pick_div(M, (256, 128, 64, 32, 16))
        if tm is None:
            Mp, tm = _round_up(M, 256), 256
        else:
            Mp = M
    # K (contraction): multiple of 128 (or full if < 128), tk up to 512.
    if K < 128:
        Kp, tk = K, K
    else:
        Kp = _round_up(K, 128)
        tk = _pick_div(Kp, (512, 384, 256, 128))
        if tk == 128 and Kp > 128:
            Kp = _round_up(K, 256)
            tk = 256
    # N (output lanes): multiple of 128 (or full if <= 256), tn up to 256.
    if N <= 256:
        Np, tn = N, N
    else:
        tn = _pick_div(N, (256, 128))
        if tn is None:
            Np, tn = _round_up(N, 128), 128
        else:
            Np = N
    return Mp, Kp, Np, tm, tk, tn


# -----------------------------------------------------------------------------
# Pallas kernel 1: fused bf16 matmul + BN batch-statistics epilogue
#   grid = (j over N-blocks [parallel], i over M-blocks, k over K-blocks)
#   outputs: conv result (bf16) + per-channel sum / sum-of-squares (fp32),
#   the stats blocks are resident across the (i, k) sweep for each j.
# -----------------------------------------------------------------------------
def _matmul_stats_kernel(a_ref, b_ref, o_ref, sum_ref, sq_ref, acc_ref):
    i = pl.program_id(1)
    k = pl.program_id(2)
    nk = pl.num_programs(2)

    @pl.when(k == 0)
    def _():
        acc_ref[...] = jnp.zeros_like(acc_ref)

    @pl.when(jnp.logical_and(i == 0, k == 0))
    def _():
        sum_ref[...] = jnp.zeros_like(sum_ref)
        sq_ref[...] = jnp.zeros_like(sq_ref)

    acc_ref[...] += jnp.dot(a_ref[...], b_ref[...],
                            preferred_element_type=jnp.float32)

    @pl.when(k == nk - 1)
    def _():
        y = acc_ref[...]
        o_ref[...] = y.astype(o_ref.dtype)
        sum_ref[...] += jnp.sum(y, axis=0, keepdims=True)
        sq_ref[...] += jnp.sum(y * y, axis=0, keepdims=True)


@jax.jit
def pallas_matmul_stats(a_bf16, b_bf16):
    M, K = a_bf16.shape
    _, N = b_bf16.shape
    Mp, Kp, Np, tm, tk, tn = _mm_tiles(M, K, N)

    a = a_bf16
    if Mp != M or Kp != K:
        a = jnp.pad(a, ((0, Mp - M), (0, Kp - K)))
    b = b_bf16
    if Kp != K or Np != N:
        b = jnp.pad(b, ((0, Kp - K), (0, Np - N)))

    out, s, sq = pl.pallas_call(
        _matmul_stats_kernel,
        out_shape=(jax.ShapeDtypeStruct((Mp, Np), jnp.bfloat16),
                   jax.ShapeDtypeStruct((1, Np), jnp.float32),
                   jax.ShapeDtypeStruct((1, Np), jnp.float32)),
        grid=(Np // tn, Mp // tm, Kp // tk),
        in_specs=[pl.BlockSpec((tm, tk), lambda j, i, k: (i, k)),
                  pl.BlockSpec((tk, tn), lambda j, i, k: (k, j))],
        out_specs=(pl.BlockSpec((tm, tn), lambda j, i, k: (i, j)),
                   pl.BlockSpec((1, tn), lambda j, i, k: (0, j)),
                   pl.BlockSpec((1, tn), lambda j, i, k: (0, j))),
        scratch_shapes=[pltpu.VMEM((tm, tn), jnp.float32)],
        compiler_params=pltpu.CompilerParams(
            dimension_semantics=("parallel", "arbitrary", "arbitrary")),
    )(a, b)
    return out[:M, :N], s[0, :N], sq[0, :N]


# -----------------------------------------------------------------------------
# Pallas kernel 2: fused BN-apply (+ optional residual add) (+ optional ReLU)
#   bf16 in/out, fp32 math.
# -----------------------------------------------------------------------------
def _bn_act_kernel(x_ref, scale_ref, shift_ref, o_ref, *, relu):
    y = x_ref[...].astype(jnp.float32) * scale_ref[...] + shift_ref[...]
    if relu:
        y = jnp.maximum(y, 0.0)
    o_ref[...] = y.astype(o_ref.dtype)


def _bn_add_act_kernel(x_ref, r_ref, scale_ref, shift_ref, o_ref, *, relu):
    y = (x_ref[...].astype(jnp.float32) * scale_ref[...] + shift_ref[...]
         + r_ref[...].astype(jnp.float32))
    if relu:
        y = jnp.maximum(y, 0.0)
    o_ref[...] = y.astype(o_ref.dtype)


@functools.partial(jax.jit, static_argnames=("relu",))
def pallas_bn_act(x, scale, shift, *, relu):
    M, C = x.shape
    Mp, tm = _row_tile(M)
    x_p = x if Mp == M else jnp.pad(x, ((0, Mp - M), (0, 0)))
    out = pl.pallas_call(
        functools.partial(_bn_act_kernel, relu=relu),
        out_shape=jax.ShapeDtypeStruct((Mp, C), jnp.bfloat16),
        grid=(Mp // tm,),
        in_specs=[pl.BlockSpec((tm, C), lambda i: (i, 0)),
                  pl.BlockSpec((1, C), lambda i: (0, 0)),
                  pl.BlockSpec((1, C), lambda i: (0, 0))],
        out_specs=pl.BlockSpec((tm, C), lambda i: (i, 0)),
        compiler_params=pltpu.CompilerParams(
            dimension_semantics=("parallel",)),
    )(x_p, scale, shift)
    return out[:M]


@functools.partial(jax.jit, static_argnames=("relu",))
def pallas_bn_add_act(x, residual, scale, shift, *, relu):
    M, C = x.shape
    Mp, tm = _row_tile(M)
    x_p = x if Mp == M else jnp.pad(x, ((0, Mp - M), (0, 0)))
    r_p = residual if Mp == M else jnp.pad(residual, ((0, Mp - M), (0, 0)))
    out = pl.pallas_call(
        functools.partial(_bn_add_act_kernel, relu=relu),
        out_shape=jax.ShapeDtypeStruct((Mp, C), jnp.bfloat16),
        grid=(Mp // tm,),
        in_specs=[pl.BlockSpec((tm, C), lambda i: (i, 0)),
                  pl.BlockSpec((tm, C), lambda i: (i, 0)),
                  pl.BlockSpec((1, C), lambda i: (0, 0)),
                  pl.BlockSpec((1, C), lambda i: (0, 0))],
        out_specs=pl.BlockSpec((tm, C), lambda i: (i, 0)),
        compiler_params=pltpu.CompilerParams(
            dimension_semantics=("parallel",)),
    )(x_p, r_p, scale, shift)
    return out[:M]


# -----------------------------------------------------------------------------
# Pallas kernel 3: 3x3 / stride-2 / pad-1 max pool.
#   The kernel computes the stride-1 3x3 max map per image with unit-stride
#   slices (separable row/col max); the stride-2 subsample is a cheap XLA slice.
# -----------------------------------------------------------------------------
def _maxpool_kernel(x_ref, o_ref):
    x = x_ref[...].astype(jnp.float32)            # (1, H+2, W+2, C)
    H, W = o_ref.shape[1], o_ref.shape[2]
    r = jnp.maximum(jnp.maximum(x[:, :, 0:W, :], x[:, :, 1:W + 1, :]),
                    x[:, :, 2:W + 2, :])          # (1, H+2, W, C)
    m = jnp.maximum(jnp.maximum(r[:, 0:H, :, :], r[:, 1:H + 1, :, :]),
                    r[:, 2:H + 2, :, :])          # (1, H, W, C)
    o_ref[...] = m.astype(o_ref.dtype)


@jax.jit
def pallas_maxpool_3x3_s2_p1(x_nhwc):
    N, H, W, C = x_nhwc.shape
    xp = jnp.pad(x_nhwc, ((0, 0), (1, 1), (1, 1), (0, 0)),
                 constant_values=-jnp.inf)
    full = pl.pallas_call(
        _maxpool_kernel,
        out_shape=jax.ShapeDtypeStruct((N, H, W, C), x_nhwc.dtype),
        grid=(N,),
        in_specs=[pl.BlockSpec((1, H + 2, W + 2, C), lambda n: (n, 0, 0, 0))],
        out_specs=pl.BlockSpec((1, H, W, C), lambda n: (n, 0, 0, 0)),
        compiler_params=pltpu.CompilerParams(
            dimension_semantics=("parallel",)),
    )(xp)
    return full[:, ::2, ::2, :]


# -----------------------------------------------------------------------------
# Pallas kernel 4: global average pool (AdaptiveAvgPool2d((1,1)) + squeeze)
# -----------------------------------------------------------------------------
def _avgpool_kernel(x_ref, o_ref):
    o_ref[...] = jnp.mean(x_ref[...].astype(jnp.float32), axis=1,
                          keepdims=True)


@jax.jit
def pallas_global_avgpool(x_nhwc):
    N, H, W, C = x_nhwc.shape
    x = x_nhwc.reshape(N, H * W, C)
    out = pl.pallas_call(
        _avgpool_kernel,
        out_shape=jax.ShapeDtypeStruct((N, 1, C), jnp.float32),
        grid=(N,),
        in_specs=[pl.BlockSpec((1, H * W, C), lambda i: (i, 0, 0))],
        out_specs=pl.BlockSpec((1, 1, C), lambda i: (i, 0, 0)),
        compiler_params=pltpu.CompilerParams(
            dimension_semantics=("parallel",)),
    )(x)
    return out.reshape(N, C)


# -----------------------------------------------------------------------------
# JAX glue: patch extraction, conv+BN wrapper, ResNet-50 structure
# -----------------------------------------------------------------------------
def _im2col(x_nhwc, KH, KW, stride, pad):
    """Extract bf16 conv patches. 1x1 convs are a pure reshape (no copy)."""
    N, H, W, Cin = x_nhwc.shape
    OH = (H + 2 * pad - KH) // stride + 1
    OW = (W + 2 * pad - KW) // stride + 1
    if KH == 1 and KW == 1 and pad == 0:
        xs = x_nhwc if stride == 1 else x_nhwc[:, ::stride, ::stride, :]
        return xs.reshape(N * OH * OW, Cin), (N, OH, OW)
    # TODO(synk): direct in-kernel tap reads (no materialized im2col) would
    # need strided BlockSpec indexing; patches are built here in bf16 instead.
    xp = jnp.pad(x_nhwc, ((0, 0), (pad, pad), (pad, pad), (0, 0)))
    cols = []
    for di in range(KH):
        for dj in range(KW):
            cols.append(xp[:, di:di + stride * (OH - 1) + 1:stride,
                           dj:dj + stride * (OW - 1) + 1:stride, :])
    patches = jnp.stack(cols, axis=3).reshape(N * OH * OW, KH * KW * Cin)
    return patches, (N, OH, OW)


@functools.partial(jax.jit, static_argnames=("stride", "pad", "relu"))
def conv_bn(x_nhwc, w_hwio, bn, *, stride, pad, relu, residual=None):
    KH, KW, Cin, Cout = w_hwio.shape
    patches, (N, OH, OW) = _im2col(x_nhwc, KH, KW, stride, pad)
    wmat = w_hwio.reshape(KH * KW * Cin, Cout)
    y2d, s, sq = pallas_matmul_stats(patches, wmat)

    # BN training-mode batch statistics from the fused fp32 reductions.
    M = N * OH * OW
    mean = s / M
    var = jnp.maximum(sq / M - mean * mean, 0.0)   # biased variance, clamped
    inv = bn["gamma"] / jnp.sqrt(var + 1e-5)
    scale = inv.reshape(1, Cout).astype(jnp.float32)
    shift = (bn["beta"] - mean * inv).reshape(1, Cout).astype(jnp.float32)

    if residual is None:
        y2d = pallas_bn_act(y2d, scale, shift, relu=relu)
    else:
        r2d = residual.reshape(M, Cout)
        y2d = pallas_bn_add_act(y2d, r2d, scale, shift, relu=relu)
    return y2d.reshape(N, OH, OW, Cout)


def _make_conv(key, kh, kw, cin, cout):
    fan_out = kh * kw * cout
    std = math.sqrt(2.0 / fan_out)               # kaiming_normal_(fan_out, relu)
    w = jax.random.normal(key, (kh, kw, cin, cout), jnp.float32) * std
    return w.astype(jnp.bfloat16)


def _make_bn(c):
    return {"gamma": jnp.ones((c,), jnp.float32),
            "beta": jnp.zeros((c,), jnp.float32)}


def init_resnet50_params(key):
    keys = iter(jax.random.split(key, 64))
    params = {"conv1": _make_conv(next(keys), 7, 7, 3, 64), "bn1": _make_bn(64)}
    cfg = [(64, 3), (128, 4), (256, 6), (512, 3)]
    inplanes = 64
    layers = []
    for planes, blocks in cfg:
        blks = []
        for b in range(blocks):
            blk = {
                "conv1": _make_conv(next(keys), 1, 1, inplanes, planes),
                "bn1": _make_bn(planes),
                "conv2": _make_conv(next(keys), 3, 3, planes, planes),
                "bn2": _make_bn(planes),
                "conv3": _make_conv(next(keys), 1, 1, planes, planes * 4),
                "bn3": _make_bn(planes * 4),
            }
            if b == 0:
                blk["downsample"] = {
                    "conv": _make_conv(next(keys), 1, 1, inplanes, planes * 4),
                    "bn": _make_bn(planes * 4),
                }
            blks.append(blk)
            inplanes = planes * 4
        layers.append(blks)
    params["layers"] = layers
    return params


def visual_embedding_forward(params, x_nchw):
    # layout: input is NCHW (PyTorch convention); transpose once to NHWC bf16.
    x = jnp.transpose(x_nchw, (0, 2, 3, 1)).astype(jnp.bfloat16)
    # stem
    x = conv_bn(x, params["conv1"], params["bn1"], stride=2, pad=3, relu=True)
    x = pallas_maxpool_3x3_s2_p1(x)
    # bottleneck stages
    stage_strides = [1, 2, 2, 2]
    for li, blocks in enumerate(params["layers"]):
        for bi, blk in enumerate(blocks):
            s = stage_strides[li] if bi == 0 else 1
            identity = x
            out = conv_bn(x, blk["conv1"], blk["bn1"], stride=1, pad=0,
                          relu=True)
            out = conv_bn(out, blk["conv2"], blk["bn2"], stride=s, pad=1,
                          relu=True)
            if "downsample" in blk:
                identity = conv_bn(x, blk["downsample"]["conv"],
                                   blk["downsample"]["bn"], stride=s, pad=0,
                                   relu=False)
            x = conv_bn(out, blk["conv3"], blk["bn3"], stride=1, pad=0,
                        relu=True, residual=identity)
    # AdaptiveAvgPool2d((1,1)) + squeeze(-1).squeeze(-1)  ->  (N, 2048) fp32
    return pallas_global_avgpool(x)

# TODO(synk): torchvision checkpoint loading has no Pallas equivalent; weights
# are deterministic Kaiming-normal inits with identical shapes.


if __name__ == "__main__":
    root = jax.random.PRNGKey(0)
    pkey, xkey = jax.random.split(root)
    params = init_resnet50_params(pkey)
    x = jax.random.normal(xkey, (2, 3, 64, 64), jnp.float32)   # NCHW input
    out = visual_embedding_forward(params, x)
    out = jax.block_until_ready(out)
    assert out.shape == (2, 2048), out.shape
    assert bool(jnp.all(jnp.isfinite(out)))
    print("KERNEL_OK")
</pallas_src>

<mosaic_0001>
module attributes {stable_mosaic.version = 11 : i64} {
  func.func @_matmul_stats_kernel(%arg0: i32, %arg1: i32, %arg2: i32, %arg3: memref<256x256xbf16, #tpu.memory_space<vmem>>, %arg4: memref<256x64xbf16, #tpu.memory_space<vmem>>, %arg5: memref<256x64xbf16, #tpu.memory_space<vmem>>, %arg6: memref<1x64xf32, #tpu.memory_space<vmem>>, %arg7: memref<1x64xf32, #tpu.memory_space<vmem>>, %arg8: memref<256x64xf32, #tpu.memory_space<vmem>>) attributes {dimension_semantics = [#tpu.dimension_semantics<parallel>, #tpu.dimension_semantics<arbitrary>, #tpu.dimension_semantics<arbitrary>], iteration_bounds = array<i64: 1, 8, 1>, scalar_prefetch = 0 : i64, scratch_operands = 1 : i64, tpu.core_type = #tpu.core_type<tc>, window_params = [{transform_indices = @transform_0, window_bounds = array<i64: 256, 256>}, {transform_indices = @transform_1, window_bounds = array<i64: 256, 64>}, {transform_indices = @transform_2, window_bounds = array<i64: 256, 64>}, {transform_indices = @transform_3, window_bounds = array<i64: 1, 64>}, {transform_indices = @transform_4, window_bounds = array<i64: 1, 64>}]} {
    %c0_i32 = arith.constant 0 : i32
    %0 = arith.cmpi eq, %arg2, %c0_i32 : i32
    %1 = arith.extui %0 : i1 to i32
    %c0_i32_0 = arith.constant 0 : i32
    %2 = arith.cmpi ne, %1, %c0_i32_0 : i32
    scf.if %2 {
      %cst_13 = arith.constant 0.000000e+00 : f32
      %17 = vector.broadcast %cst_13 : f32 to vector<256x64xf32>
      %c0_14 = arith.constant 0 : index
      %c0_15 = arith.constant 0 : index
      %18 = vector.load %arg8[%c0_14, %c0_15] : memref<256x64xf32, #tpu.memory_space<vmem>>, vector<256x64xf32>
      tpu.vector_store %arg8[%c0_14, %c0_15], %17 {strides = array<i32>} : memref<256x64xf32, #tpu.memory_space<vmem>>, vector<256x64xf32>,
    } else {
    }
    %c0_i32_1 = arith.constant 0 : i32
    %3 = arith.cmpi eq, %arg1, %c0_i32_1 : i32
    %c0_i32_2 = arith.constant 0 : i32
    %4 = arith.cmpi eq, %arg2, %c0_i32_2 : i32
    %5 = arith.andi %3, %4 : i1
    %6 = arith.extui %5 : i1 to i32
    %c0_i32_3 = arith.constant 0 : i32
    %7 = arith.cmpi ne, %6, %c0_i32_3 : i32
    scf.if %7 {
      %cst_13 = arith.constant 0.000000e+00 : f32
      %17 = vector.broadcast %cst_13 : f32 to vector<1x64xf32>
      %c0_14 = arith.constant 0 : index
      %c0_15 = arith.constant 0 : index
      %18 = vector.load %arg6[%c0_14, %c0_15] : memref<1x64xf32, #tpu.memory_space<vmem>>, vector<1x64xf32>
      tpu.vector_store %arg6[%c0_14, %c0_15], %17 {strides = array<i32>} : memref<1x64xf32, #tpu.memory_space<vmem>>, vector<1x64xf32>,
      %cst_16 = arith.constant 0.000000e+00 : f32
      %19 = vector.broadcast %cst_16 : f32 to vector<1x64xf32>
      %c0_17 = arith.constant 0 : index
      %c0_18 = arith.constant 0 : index
      %20 = vector.load %arg7[%c0_17, %c0_18] : memref<1x64xf32, #tpu.memory_space<vmem>>, vector<1x64xf32>
      tpu.vector_store %arg7[%c0_17, %c0_18], %19 {strides = array<i32>} : memref<1x64xf32, #tpu.memory_space<vmem>>, vector<1x64xf32>,
    } else {
    }
    %c0 = arith.constant 0 : index
    %c0_4 = arith.constant 0 : index
    %8 = vector.load %arg8[%c0, %c0_4] : memref<256x64xf32, #tpu.memory_space<vmem>>, vector<256x64xf32>
    %c0_5 = arith.constant 0 : index
    %c0_6 = arith.constant 0 : index
    %9 = vector.load %arg3[%c0_5, %c0_6] : memref<256x256xbf16, #tpu.memory_space<vmem>>, vector<256x256xbf16>
    %c0_7 = arith.constant 0 : index
    %c0_8 = arith.constant 0 : index
    %10 = vector.load %arg4[%c0_7, %c0_8] : memref<256x64xbf16, #tpu.memory_space<vmem>>, vector<256x64xbf16>
    %cst = arith.constant dense<0.000000e+00> : vector<256x64xf32>
    %11 = tpu.matmul %9, %10, %cst {dimension_numbers = #tpu.dot_dimension_numbers<[1], [0], [0], [1], [0, 0, 1, 1], [], []>} : vector<256x256xbf16>, vector<256x64xbf16>, vector<256x64xf32> -> vector<256x64xf32>
    %12 = arith.addf %8, %11 : vector<256x64xf32>
    %c0_9 = arith.constant 0 : index
    %c0_10 = arith.constant 0 : index
    %13 = vector.load %arg8[%c0_9, %c0_10] : memref<256x64xf32, #tpu.memory_space<vmem>>, vector<256x64xf32>
    tpu.vector_store %arg8[%c0_9, %c0_10], %12 {strides = array<i32>} : memref<256x64xf32, #tpu.memory_space<vmem>>, vector<256x64xf32>,
    %c0_i32_11 = arith.constant 0 : i32
    %14 = arith.cmpi eq, %arg2, %c0_i32_11 : i32
    %15 = arith.extui %14 : i1 to i32
    %c0_i32_12 = arith.constant 0 : i32
    %16 = arith.cmpi ne, %15, %c0_i32_12 : i32
    scf.if %16 {
      %c0_13 = arith.constant 0 : index
      %c0_14 = arith.constant 0 : index
      %17 = vector.load %arg8[%c0_13, %c0_14] : memref<256x64xf32, #tpu.memory_space<vmem>>, vector<256x64xf32>
      %18 = arith.truncf %17 : vector<256x64xf32> to vector<256x64xbf16>
      %c0_15 = arith.constant 0 : index
      %c0_16 = arith.constant 0 : index
      %19 = vector.load %arg5[%c0_15, %c0_16] : memref<256x64xbf16, #tpu.memory_space<vmem>>, vector<256x64xbf16>
      tpu.vector_store %arg5[%c0_15, %c0_16], %18 {strides = array<i32>} : memref<256x64xbf16, #tpu.memory_space<vmem>>, vector<256x64xbf16>,
      %c0_17 = arith.constant 0 : index
      %c0_18 = arith.constant 0 : index
      %20 = vector.load %arg6[%c0_17, %c0_18] : memref<1x64xf32, #tpu.memory_space<vmem>>, vector<1x64xf32>
      %cst_19 = arith.constant dense<0.000000e+00> : vector<64xf32>
      %21 = vector.multi_reduction <add>, %17, %cst_19 [0] : vector<256x64xf32> to vector<64xf32>
      %22 = vector.shape_cast %21 : vector<64xf32> to vector<1x64xf32>
      %23 = arith.addf %20, %22 : vector<1x64xf32>
      %c0_20 = arith.constant 0 : index
      %c0_21 = arith.constant 0 : index
      %24 = vector.load %arg6[%c0_20, %c0_21] : memref<1x64xf32, #tpu.memory_space<vmem>>, vector<1x64xf32>
      tpu.vector_store %arg6[%c0_20, %c0_21], %23 {strides = array<i32>} : memref<1x64xf32, #tpu.memory_space<vmem>>, vector<1x64xf32>,
      %c0_22 = arith.constant 0 : index
      %c0_23 = arith.constant 0 : index
      %25 = vector.load %arg7[%c0_22, %c0_23] : memref<1x64xf32, #tpu.memory_space<vmem>>, vector<1x64xf32>
      %26 = arith.mulf %17, %17 : vector<256x64xf32>
      %cst_24 = arith.constant dense<0.000000e+00> : vector<64xf32>
      %27 = vector.multi_reduction <add>, %26, %cst_24 [0] : vector<256x64xf32> to vector<64xf32>
      %28 = vector.shape_cast %27 : vector<64xf32> to vector<1x64xf32>
      %29 = arith.addf %25, %28 : vector<1x64xf32>
      %c0_25 = arith.constant 0 : index
      %c0_26 = arith.constant 0 : index
      %30 = vector.load %arg7[%c0_25, %c0_26] : memref<1x64xf32, #tpu.memory_space<vmem>>, vector<1x64xf32>
      tpu.vector_store %arg7[%c0_25, %c0_26], %29 {strides = array<i32>} : memref<1x64xf32, #tpu.memory_space<vmem>>, vector<1x64xf32>,
    } else {
    }
    return
  }
  func.func @transform_0(%arg0: i32, %arg1: i32, %arg2: i32) -> (i32, i32) {
    %c0_i32 = arith.constant 0 : i32
    return %arg1, %arg2 : i32, i32
  }
  func.func @transform_1(%arg0: i32, %arg1: i32, %arg2: i32) -> (i32, i32) {
    %c0_i32 = arith.constant 0 : i32
    return %arg2, %arg0 : i32, i32
  }
  func.func @transform_2(%arg0: i32, %arg1: i32, %arg2: i32) -> (i32, i32) {
    %c0_i32 = arith.constant 0 : i32
    return %arg1, %arg0 : i32, i32
  }
  func.func @transform_3(%arg0: i32, %arg1: i32, %arg2: i32) -> (i32, i32) {
    %c0_i32 = arith.constant 0 : i32
    %c0_i32_0 = arith.constant 0 : i32
    return %c0_i32, %arg0 : i32, i32
  }
  func.func @transform_4(%arg0: i32, %arg1: i32, %arg2: i32) -> (i32, i32) {
    %c0_i32 = arith.constant 0 : i32
    %c0_i32_0 = arith.constant 0 : i32
    return %c0_i32, %arg0 : i32, i32
  }
}

</mosaic_0001>

<bundles_post_ra>
// kernel: pallas_matmul_stats.1
= control target key start
LH: loop header
LB: loop body
LE: loop exit
PB: predicated region body
PF: predicated region fallthrough
CT: control target
= control target key end

     0   :  { %10 = vsyncpa [#allocation4], 0  ;;  %s2443_s0 = inlined_call_operand.vmem [shape: bf16[2048,256], index: 0, kind: input, shape index: {}]   ;;  %s2444_s1 = inlined_call_operand.vmem [shape: bf16[256,64], index: 1, kind: input, shape index: {}]   ;;  %s2445_s2 = inlined_call_operand.vmem [shape: bf16[2048,64], index: 2, kind: output, shape index: {0}]   ;;  %s2446_s3 = inlined_call_operand.hbm [shape: f32[1,64], index: 3, kind: output, shape index: {1}]   ;;  %s2447_s4 = inlined_call_operand.hbm [shape: f32[1,64], index: 4, kind: output, shape index: {2}]  }
   0x1   :  { %11 = vsyncpa [#allocation6], 0  ;;  %s1917_s15 = smov 0   ;;  %s1919_s16 = smov 0  }
   0x2   :  { %s1921_s17 = smov 0  }
   0x3 LB: > { %s1440_s18 = sadd.s32 4294967295, %s1886_s17   ;;  %s32_s19 = sadd.s32 1, %s1882_s16  ;;  %s1886_s17 = sphi %s1921_s17, %s17_s17   ;;  %s1882_s16 = sphi %s1919_s16, %s2451_s16   ;;  %s1878_s15 = sphi %s1917_s15, %s2450_s15  }
   0x4   : > { %p34_p0 = scmp.ge.s32.totalorder %s32_s19, 8  ;;  %p1445_p1 = scmp.ge.s32.totalorder %s1886_s17, 1 }
   0x5   : > { %p215_p2 = scmp.lt.s32.totalorder %s1886_s17, 9 }
   0x6   : > { %s2453_s19 = smov (%p34_p0, %s32_s19), 0 }
   0x7   : > { %p216_p3 = pnand %p1445_p1, %p215_p2 }
   0x8   : > { %s1446_s20 = sshll.u32 (!%p216_p3), %s1878_s15, 5  ;;  %vm292_vm0 = vcmask (!%p216_p3), 523264   ;;  %p325_p4 = scmp.eq.s32.totalorder (!%p216_p3), %s1878_s15, 0  ;;  %v1888_v0 = vmov (!%p216_p3), 0.0  }
   0x9   : > { %219 = sbr.rel (%p216_p3) target bundleno = 430 (0x1ae), region = 28  ;;  %p1942_p5 = scmp.lt.s32.totalorder (!%p216_p3), %s1446_s20, 255  ;;  %293 = vst.msk [vmem:[#allocation2] sm:$0xff] (!%p216_p3), %vm292_vm0, %v1888_v0  ;;  %294 = vst.msk [vmem:[#allocation2 + $0x8] sm:$0xff] (!%p216_p3), %vm292_vm0, %v1888_v0 }
   0xa   : > { %295 = vst.msk [vmem:[#allocation2 + $0x10] sm:$0xff] (!%p216_p3), %vm292_vm0, %v1888_v0  ;;  %296 = vst.msk [vmem:[#allocation2 + $0x18] sm:$0xff] (!%p216_p3), %vm292_vm0, %v1888_v0 }
   0xb   : > { %297 = vst.msk [vmem:[#allocation2 + $0x20] sm:$0xff] (!%p216_p3), %vm292_vm0, %v1888_v0  ;;  %298 = vst.msk [vmem:[#allocation2 + $0x28] sm:$0xff] (!%p216_p3), %vm292_vm0, %v1888_v0 }
   0xc   : > { %299 = vst.msk [vmem:[#allocation2 + $0x30] sm:$0xff] (!%p216_p3), %vm292_vm0, %v1888_v0  ;;  %300 = vst.msk [vmem:[#allocation2 + $0x38] sm:$0xff] (!%p216_p3), %vm292_vm0, %v1888_v0 }
   0xd   : > { %301 = vst.msk [vmem:[#allocation2 + $0x40] sm:$0xff] (!%p216_p3), %vm292_vm0, %v1888_v0  ;;  %302 = vst.msk [vmem:[#allocation2 + $0x48] sm:$0xff] (!%p216_p3), %vm292_vm0, %v1888_v0 }
   0xe   : > { %303 = vst.msk [vmem:[#allocation2 + $0x50] sm:$0xff] (!%p216_p3), %vm292_vm0, %v1888_v0  ;;  %304 = vst.msk [vmem:[#allocation2 + $0x58] sm:$0xff] (!%p216_p3), %vm292_vm0, %v1888_v0 }
   0xf   : > { %305 = vst.msk [vmem:[#allocation2 + $0x60] sm:$0xff] (!%p216_p3), %vm292_vm0, %v1888_v0  ;;  %306 = vst.msk [vmem:[#allocation2 + $0x68] sm:$0xff] (!%p216_p3), %vm292_vm0, %v1888_v0 }
  0x10   : > { %307 = vst.msk [vmem:[#allocation2 + $0x70] sm:$0xff] %vm292_vm0, %v1888_v0  ;;  %308 = vst.msk [vmem:[#allocation2 + $0x78] sm:$0xff] %vm292_vm0, %v1888_v0  ;;  %s2455_s20 = smov (!%p1942_p5, %s1446_s20), 255  ;;  %vm330_vm1 = vcmask (%p325_p4), 516096   ;;  %v1889_v1 = vmov (%p325_p4), 0.0  }
  0x11   : > { %309 = vst.msk [vmem:[#allocation2 + $0x80] sm:$0xff] %vm292_vm0, %v1888_v0  ;;  %310 = vst.msk [vmem:[#allocation2 + $0x88] sm:$0xff] %vm292_vm0, %v1888_v0  ;;  %s1538_s22 = sshll.u32 %s2455_s20, 3  ;;  %s1450_s23 = sshll.u32 %s2455_s20, 2 }
  0x12   : > { %311 = vst.msk [vmem:[#allocation2 + $0x90] sm:$0xff] %vm292_vm0, %v1888_v0  ;;  %312 = vst.msk [vmem:[#allocation2 + $0x98] sm:$0xff] %vm292_vm0, %v1888_v0  ;;  %s1985_s26 = scalar_lea.vmem %s2443_s0, %s1538_s22  ;;  %s1990_s29 = scalar_lea.vmem %s2445_s2, %s1450_s23 }
  0x13   : > { %313 = vst.msk [vmem:[#allocation2 + $0xa0] sm:$0xff] %vm292_vm0, %v1888_v0  ;;  %314 = vst.msk [vmem:[#allocation2 + $0xa8] sm:$0xff] %vm292_vm0, %v1888_v0  ;;  %329 = sbr.rel (!%p325_p4) target bundleno = 26 (0x1a), region = 36 }
  0x14   : > { %315 = vst.msk [vmem:[#allocation2 + $0xb0] sm:$0xff] %vm292_vm0, %v1888_v0  ;;  %316 = vst.msk [vmem:[#allocation2 + $0xb8] sm:$0xff] %vm292_vm0, %v1888_v0 }
  0x15   : > { %317 = vst.msk [vmem:[#allocation2 + $0xc0] sm:$0xff] %vm292_vm0, %v1888_v0  ;;  %318 = vst.msk [vmem:[#allocation2 + $0xc8] sm:$0xff] %vm292_vm0, %v1888_v0 }
  0x16   : > { %319 = vst.msk [vmem:[#allocation2 + $0xd0] sm:$0xff] %vm292_vm0, %v1888_v0  ;;  %320 = vst.msk [vmem:[#allocation2 + $0xd8] sm:$0xff] %vm292_vm0, %v1888_v0 }
  0x17   : > { %321 = vst.msk [vmem:[#allocation2 + $0xe0] sm:$0xff] %vm292_vm0, %v1888_v0  ;;  %322 = vst.msk [vmem:[#allocation2 + $0xe8] sm:$0xff] %vm292_vm0, %v1888_v0 }
  0x18   : > { %323 = vst.msk [vmem:[#allocation2 + $0xf0] sm:$0xff] %vm292_vm0, %v1888_v0  ;;  %324 = vst.msk [vmem:[#allocation2 + $0xf8] sm:$0xff] %vm292_vm0, %v1888_v0 }
  0x19   : > { %331 = vst.msk [vmem:[#allocation3] sm:$0x1] (%p325_p4), %vm330_vm1, %v1889_v1  ;;  %332 = vst.msk [vmem:[#allocation5] sm:$0x1] (%p325_p4), %vm330_vm1, %v1889_v1 }
  0x1a PF: > { %v1740_v2 = vld [vmem:[%s2444_s1 + $0x40] sm:$0xff]   ;;  %v1742_v4 = vld [vmem:[%s2444_s1 + $0x48] sm:$0xff]   ;;  %v1744_v6 = vld [vmem:[%s2444_s1 + $0x50] sm:$0xff]   ;;  %vm1074_vm2 = vcmask 519168   ;;  %vm1178_vm3 = vcmask 516096   ;;  %p2376_p6 = scmp.eq.s32.totalorder %s1440_s18, 7 }
  0x1b   : > { %v1741_v3 = vld [vmem:[%s2444_s1] sm:$0xff]   ;;  %1572 = vmatprep.subr.bf16.mxu0 %v1740_v2  ;;  %1684 = vmatprep.subr.bf16.mxu1 %v1740_v2  ;;  %v1743_v5 = vld [vmem:[%s2444_s1 + $0x8] sm:$0xff]   ;;  %v1745_v7 = vld [vmem:[%s2444_s1 + $0x10] sm:$0xff]   ;;  %s1891_s21 = smov [#allocation5]  }
  0x1c   : > { %1573 = vmatpush3.bf16.msra.mxu0 %v1741_v3  ;;  %1692 = vmatpush3.bf16.msra.mxu1 %v1741_v3  ;;  %v1746_v8 = vld [vmem:[%s2444_s1 + $0x58] sm:$0xff]   ;;  %v1748_v10 = vld [vmem:[%s2444_s1 + $0x60] sm:$0xff]   ;;  %v1750_v12 = vld [vmem:[%s2444_s1 + $0x68] sm:$0xff]   ;;  %s1318_s22 = sshll.u32 %s1891_s21, 4  ;;  %s2381_s22 = int_to_ptr.vmem [resolvable:$true] %s1318_s22 }
  0x1d   : > { %1574 = vmatprep.subr.bf16.mxu0 %v1742_v4  ;;  %1685 = vmatprep.subr.bf16.mxu1 %v1742_v4  ;;  %v1747_v9 = vld [vmem:[%s2444_s1 + $0x18] sm:$0xff]   ;;  %v1749_v11 = vld [vmem:[%s2444_s1 + $0x20] sm:$0xff]   ;;  %v1751_v14 = vld [vmem:[%s2444_s1 + $0x28] sm:$0xff]  }
  0x1e   : > { %v1758_v13 = vld [vmem:[%s1985_s26 + $0x4] ss:$8 sps:$4 sm:$0xff]   ;;  %v1752_v15 = vld [vmem:[%s2444_s1 + $0x70] sm:$0xff]   ;;  %v1754_v18 = vld [vmem:[%s2444_s1 + $0x78] sm:$0xff]  }
  0x1f   : > { %717 = vmatprep.mubr.bf16.mxu0 %v1758_v13  ;;  %v1770_v16 = vld [vmem:[%s1985_s26 + $0x84] ss:$8 sps:$4 sm:$0xff]   ;;  %v1753_v17 = vld [vmem:[%s2444_s1 + $0x30] sm:$0xff]   ;;  %v1755_v19 = vld [vmem:[%s2444_s1 + $0x38] sm:$0xff]  }
  0x20   : > { %1575 = vmatpush3.bf16.msra.mxu0 %v1743_v5  ;;  %1693 = vmatpush3.bf16.msra.mxu1 %v1743_v5  ;;  %v1756_v20 = vld [vmem:[%s1985_s26] ss:$8 sps:$4 sm:$0xff]   ;;  %v1759_v21 = vld [vmem:[%s1985_s26 + $0x14] ss:$8 sps:$4 sm:$0xff]   ;;  %v1761_v24 = vld [vmem:[%s1985_s26 + $0x10] ss:$8 sps:$4 sm:$0xff]  }
  0x21   : > { %1576 = vmatprep.subr.bf16.mxu0 %v1744_v6  ;;  %1686 = vmatprep.subr.bf16.mxu1 %v1744_v6  ;;  %v1768_v22 = vld [vmem:[%s1985_s26 + $0x80] ss:$8 sps:$4 sm:$0xff]   ;;  %v1774_v23 = vld [vmem:[%s1985_s26 + $0x94] ss:$8 sps:$4 sm:$0xff]   ;;  %v1762_v25 = vld [vmem:[%s1985_s26 + $0x24] ss:$8 sps:$4 sm:$0xff]  }
  0x22   : > { %781 = vmatprep.mubr.bf16.mxu1 %v1770_v16  ;;  %v1776_v26 = vld [vmem:[%s1985_s26 + $0x90] ss:$8 sps:$4 sm:$0xff]   ;;  %v1780_v27 = vld [vmem:[%s1985_s26 + $0xa4] ss:$8 sps:$4 sm:$0xff]   ;;  %v1764_v28 = vld [vmem:[%s1985_s26 + $0x20] ss:$8 sps:$4 sm:$0xff]  }
  0x23   : > { %v1765_v29 = vld [vmem:[%s1985_s26 + $0x34] ss:$8 sps:$4 sm:$0xff]   ;;  %v1782_v30 = vld [vmem:[%s1985_s26 + $0xa0] ss:$8 sps:$4 sm:$0xff]   ;;  %v1767_v32 = vld [vmem:[%s1985_s26 + $0x30] ss:$8 sps:$4 sm:$0xff]  }
  0x24   : > { %1577 = vmatpush3.bf16.msra.mxu0 %v1745_v7  ;;  %1694 = vmatpush3.bf16.msra.mxu1 %v1745_v7  ;;  %v1786_v31 = vld [vmem:[%s1985_s26 + $0xb4] ss:$8 sps:$4 sm:$0xff]   ;;  %v1771_v33 = vld [vmem:[%s1985_s26 + $0x44] ss:$8 sps:$4 sm:$0xff]   ;;  %v1788_v34 = vld [vmem:[%s1985_s26 + $0xb0] ss:$8 sps:$4 sm:$0xff]  }
  0x25   : > { %1578 = vmatprep.subr.bf16.mxu0 %v1746_v8  ;;  %1687 = vmatprep.subr.bf16.mxu1 %v1746_v8  ;;  %v1792_v35 = vld [vmem:[%s1985_s26 + $0xc4] ss:$8 sps:$4 sm:$0xff]   ;;  %v1773_v36 = vld [vmem:[%s1985_s26 + $0x40] ss:$8 sps:$4 sm:$0xff]   ;;  %v1777_v37 = vld [vmem:[%s1985_s26 + $0x54] ss:$8 sps:$4 sm:$0xff]  }
  0x26   : > { %v1794_v38 = vld [vmem:[%s1985_s26 + $0xc0] ss:$8 sps:$4 sm:$0xff]   ;;  %v1795_v39 = vld [vmem:[%s1985_s26 + $0xd4] ss:$8 sps:$4 sm:$0xff]   ;;  %v1779_v40 = vld [vmem:[%s1985_s26 + $0x50] ss:$8 sps:$4 sm:$0xff]  }
  0x27   : > { %v1783_v41 = vld [vmem:[%s1985_s26 + $0x64] ss:$8 sps:$4 sm:$0xff]   ;;  %v1797_v42 = vld [vmem:[%s1985_s26 + $0xd0] ss:$8 sps:$4 sm:$0xff]   ;;  %v1785_v44 = vld [vmem:[%s1985_s26 + $0x60] ss:$8 sps:$4 sm:$0xff]  }
  0x28   : > { %1579 = vmatpush3.bf16.msra.mxu0 %v1747_v9  ;;  %1695 = vmatpush3.bf16.msra.mxu1 %v1747_v9  ;;  %v1798_v43 = vld [vmem:[%s1985_s26 + $0xe4] ss:$8 sps:$4 sm:$0xff]   ;;  %v1789_v45 = vld [vmem:[%s1985_s26 + $0x74] ss:$8 sps:$4 sm:$0xff]   ;;  %v1800_v46 = vld [vmem:[%s1985_s26 + $0xe0] ss:$8 sps:$4 sm:$0xff]  }
  0x29   : > { %1580 = vmatprep.subr.bf16.mxu0 %v1748_v10  ;;  %1688 = vmatprep.subr.bf16.mxu1 %v1748_v10  ;;  %v1801_v47 = vld [vmem:[%s1985_s26 + $0xf4] ss:$8 sps:$4 sm:$0xff]   ;;  %v1791_v48 = vld [vmem:[%s1985_s26 + $0x70] ss:$8 sps:$4 sm:$0xff]   ;;  %v333_v51 = vld [vmem:[#allocation2] sm:$0xff] }
  0x2a   : > { %v1803_v49 = vld [vmem:[%s1985_s26 + $0xf0] ss:$8 sps:$4 sm:$0xff]   ;;  %v349_v56 = vld [vmem:[#allocation2 + $0x80] sm:$0xff]  ;;  %v334_v58 = vld [vmem:[#allocation2 + $0x8] sm:$0xff]  ;;  %s1890_s26 = smov [#allocation3]  }
  0x2b   : > { %v350_v0 = vld [vmem:[#allocation2 + $0x88] sm:$0xff]  ;;  %v335_v7 = vld [vmem:[#allocation2 + $0x10] sm:$0xff] }
  0x2c   : > { %1581 = vmatpush3.bf16.msra.mxu0 %v1749_v11  ;;  %1696 = vmatpush3.bf16.msra.mxu1 %v1749_v11 }
  0x2d   : > { %1582 = vmatprep.subr.bf16.mxu0 %v1750_v12  ;;  %1689 = vmatprep.subr.bf16.mxu1 %v1750_v12  ;;  %v351_v12 = vld [vmem:[#allocation2 + $0x90] sm:$0xff] }
  0x30   : > { %1583 = vmatpush3.bf16.msra.mxu0 %v1751_v14  ;;  %1697 = vmatpush3.bf16.msra.mxu1 %v1751_v14  ;;  %v336_v14 = vld [vmem:[#allocation2 + $0x18] sm:$0xff] }
  0x31   : > { %1584 = vmatprep.subr.bf16.mxu0 %v1752_v15  ;;  %1690 = vmatprep.subr.bf16.mxu1 %v1752_v15 }
  0x34   : > { %1585 = vmatpush3.bf16.msra.mxu0 %v1753_v17  ;;  %1698 = vmatpush3.bf16.msra.mxu1 %v1753_v17 }
  0x35   : > { %1586 = vmatprep.subr.bf16.mxu0 %v1754_v18  ;;  %1691 = vmatprep.subr.bf16.mxu1 %v1754_v18 }
  0x38   : > { %1587 = vmatpush3.bf16.msra.mxu0 %v1755_v19  ;;  %1699 = vmatpush3.bf16.msra.mxu1 %v1755_v19 }
  0x3b   : > { %718 = vmatmul.mubr.bf16.vlgmr.msra.gmra.mrb[0].mxu0 %v1756_v20  ;;  %782 = vmatmul.mubr.bf16.vlgmr.msra.gmra.mrb[0].mxu1 %v1768_v22  ;;  %v352_v20 = vld [vmem:[#allocation2 + $0x98] sm:$0xff] }
  0x3c   : > { %725 = vmatprep.mubr.bf16.mxu0 %v1759_v21  ;;  %789 = vmatprep.mubr.bf16.mxu1 %v1774_v23 }
  0x43   : > { %726 = vmatmul.mubr.bf16.gmra.mrb[4].mxu0 %v1761_v24  ;;  %790 = vmatmul.mubr.bf16.gmra.mrb[4].mxu1 %v1776_v26 }
  0x44   : > { %733 = vmatprep.mubr.bf16.mxu0 %v1762_v25  ;;  %797 = vmatprep.mubr.bf16.mxu1 %v1780_v27 }
  0x4b   : > { %734 = vmatmul.mubr.bf16.gmra.mrb[8].mxu0 %v1764_v28  ;;  %798 = vmatmul.mubr.bf16.gmra.mrb[8].mxu1 %v1782_v30 }
  0x4c   : > { %741 = vmatprep.mubr.bf16.mxu0 %v1765_v29  ;;  %805 = vmatprep.mubr.bf16.mxu1 %v1786_v31 }
  0x53   : > { %742 = vmatmul.mubr.bf16.gmra.mrb[12].mxu0 %v1767_v32  ;;  %806 = vmatmul.mubr.bf16.gmra.mrb[12].mxu1 %v1788_v34  ;;  %v337_v34 = vld [vmem:[#allocation2 + $0x20] sm:$0xff] }
  0x54   : > { %749 = vmatprep.mubr.bf16.mxu0 %v1771_v33  ;;  %813 = vmatprep.mubr.bf16.mxu1 %v1792_v35 }
  0x5b   : > { %750 = vmatmul.mubr.bf16.gmra.mrb[16].mxu0 %v1773_v36  ;;  %814 = vmatmul.mubr.bf16.gmra.mrb[16].mxu1 %v1794_v38 }
  0x5c   : > { %757 = vmatprep.mubr.bf16.mxu0 %v1777_v37  ;;  %821 = vmatprep.mubr.bf16.mxu1 %v1795_v39 }
  0x63   : > { %758 = vmatmul.mubr.bf16.gmra.mrb[20].mxu0 %v1779_v40  ;;  %822 = vmatmul.mubr.bf16.gmra.mrb[20].mxu1 %v1797_v42  ;;  %v353_v40 = vld [vmem:[#allocation2 + $0xa0] sm:$0xff]  ;;  %v338_v42 = vld [vmem:[#allocation2 + $0x28] sm:$0xff] }
  0x64   : > { %765 = vmatprep.mubr.bf16.mxu0 %v1783_v41  ;;  %829 = vmatprep.mubr.bf16.mxu1 %v1798_v43 }
  0x6b   : > { %766 = vmatmul.mubr.bf16.gmra.mrb[24].mxu0 %v1785_v44  ;;  %830 = vmatmul.mubr.bf16.gmra.mrb[24].mxu1 %v1800_v46 }
  0x6c   : > { %773 = vmatprep.mubr.bf16.mxu0 %v1789_v45  ;;  %837 = vmatprep.mubr.bf16.mxu1 %v1801_v47 }
  0x73   : > { %774 = vmatmul.mubr.bf16.gmra.mrb[28].mxu0 %v1791_v48  ;;  %838 = vmatmul.mubr.bf16.gmra.mrb[28].mxu1 %v1803_v49 }
 0x10e   : > { %v1588_v50 = vpop.f32.mrb[0].mxu0  ;;  %v1636_v53 = vpop.f32.mrb[0].mxu1 }
 0x10f   : > { %v1589_v52 = vpop.f32.mrb[1].mxu0  ;;  %v1637_v57 = vpop.f32.mrb[1].mxu1 }
 0x110   : > { %v1590_v54 = vadd.f32 %v1589_v52, %v1588_v50  ;;  %v1591_v55 = vpop.f32.mrb[2].mxu0  ;;  %v1638_v60 = vadd.f32 %v1637_v57, %v1636_v53  ;;  %v1639_v61 = vpop.f32.mrb[2].mxu1  ;;  %v354_v57 = vld [vmem:[#allocation2 + $0xa8] sm:$0xff] }
 0x111   : > { %v1592_v59 = vpop.f32.mrb[3].mxu0  ;;  %v1640_v1 = vpop.f32.mrb[3].mxu1 }
 0x112   : > { %v846_v62 = vadd.f32 %v1590_v54, %v333_v51  ;;  %v1593_v63 = vadd.f32 %v1592_v59, %v1591_v55  ;;  %v862_v2 = vadd.f32 %v1638_v60, %v349_v56  ;;  %v1641_v3 = vadd.f32 %v1640_v1, %v1639_v61  ;;  %v339_v61 = vld [vmem:[#allocation2 + $0x30] sm:$0xff] }
 0x114   : > { %879 = vst.msk [vmem:[#allocation2] sm:$0xff] %vm292_vm0, %v846_v62  ;;  %v847_v4 = vadd.f32 %v1593_v63, %v334_v58  ;;  %895 = vst.msk [vmem:[#allocation2 + $0x80] sm:$0xff] %vm292_vm0, %v862_v2  ;;  %v863_v5 = vadd.f32 %v1641_v3, %v350_v0 }
 0x116   : > { %880 = vst.msk [vmem:[#allocation2 + $0x8] sm:$0xff] %vm292_vm0, %v847_v4  ;;  %v1594_v6 = vpop.f32.mrb[4].mxu0  ;;  %896 = vst.msk [vmem:[#allocation2 + $0x88] sm:$0xff] %vm292_vm0, %v863_v5  ;;  %v1642_v9 = vpop.f32.mrb[4].mxu1  ;;  %v355_v4 = vld [vmem:[#allocation2 + $0xb0] sm:$0xff] }
 0x117   : > { %v1595_v8 = vpop.f32.mrb[5].mxu0  ;;  %v1643_v13 = vpop.f32.mrb[5].mxu1 }
 0x118   : > { %v1596_v10 = vadd.f32 %v1595_v8, %v1594_v6  ;;  %v1597_v11 = vpop.f32.mrb[6].mxu0  ;;  %v1644_v16 = vadd.f32 %v1643_v13, %v1642_v9  ;;  %v1645_v17 = vpop.f32.mrb[6].mxu1  ;;  %v340_v6 = vld [vmem:[#allocation2 + $0x38] sm:$0xff] }
 0x119   : > { %v1598_v15 = vpop.f32.mrb[7].mxu0  ;;  %v1646_v21 = vpop.f32.mrb[7].mxu1  ;;  %v356_v13 = vld [vmem:[#allocation2 + $0xb8] sm:$0xff] }
 0x11a   : > { %v848_v18 = vadd.f32 %v1596_v10, %v335_v7  ;;  %v1599_v19 = vadd.f32 %v1598_v15, %v1597_v11  ;;  %v864_v23 = vadd.f32 %v1644_v16, %v351_v12  ;;  %v1647_v24 = vadd.f32 %v1646_v21, %v1645_v17 }
 0x11b   : > { %v2078_v22 = vld [vmem:[#allocation2] sm:$0xff] }
 0x11c   : > { %v1540_v25 = vpack.c.bf16 %v2078_v22, %v2078_v22  ;;  %881 = vst.msk [vmem:[#allocation2 + $0x10] sm:$0xff] %vm292_vm0, %v848_v18  ;;  %v849_v26 = vadd.f32 %v1599_v19, %v336_v14  ;;  %v2083_v27 = vld [vmem:[#allocation2 + $0x80] sm:$0xff]  ;;  %897 = vst.msk [vmem:[#allocation2 + $0x90] sm:$0xff] %vm292_vm0, %v864_v23  ;;  %v865_v30 = vadd.f32 %v1647_v24, %v352_v20 }
 0x11d   : > { %v2085_v28 = vld [vmem:[#allocation2 + $0x8] sm:$0xff]  ;;  %v1556_v29 = vpack.c.bf16 %v2083_v27, %v2083_v27  ;;  %v1181_v15 = vmul.f32 %v2078_v22, %v2078_v22 }
 0x11e   : > { %1075 = vst.msk [vmem:[%s1990_s29] sm:$0xf] %vm1074_vm2, %v1540_v25  ;;  %v1541_v31 = vpack.c.bf16 %v2085_v28, %v2085_v28  ;;  %v1600_v32 = vpop.f32.mrb[8].mxu0  ;;  %v2095_v33 = vld [vmem:[#allocation2 + $0x88] sm:$0xff]  ;;  %v1648_v37 = vpop.f32.mrb[8].mxu1  ;;  %v1182_v10 = vmul.f32 %v2085_v28, %v2085_v28  ;;  %v1109_v19 = vsel %vm292_vm0, %v2085_v28, 0.0 }
 0x11f   : > { %882 = vst.msk [vmem:[#allocation2 + $0x18] sm:$0xff] %vm292_vm0, %v849_v26  ;;  %v1601_v35 = vpop.f32.mrb[9].mxu0  ;;  %v1557_v36 = vpack.c.bf16 %v2095_v33, %v2095_v33  ;;  %898 = vst.msk [vmem:[#allocation2 + $0x98] sm:$0xff] %vm292_vm0, %v865_v30  ;;  %v1649_v41 = vpop.f32.mrb[9].mxu1  ;;  %v1108_v30 = vsel %vm292_vm0, %v2078_v22, 0.0 }
 0x120   : > { %1091 = vst.msk [vmem:[%s1990_s29 + $0x40] sm:$0xf] %vm1074_vm2, %v1556_v29  ;;  %1076 = vst.msk [vmem:[%s1990_s29 + $0x4] sm:$0xf] %vm1074_vm2, %v1541_v31  ;;  %v1602_v38 = vadd.f32 %v1601_v35, %v1600_v32  ;;  %v1603_v39 = vpop.f32.mrb[10].mxu0  ;;  %v1650_v44 = vadd.f32 %v1649_v41, %v1648_v37  ;;  %v1651_v45 = vpop.f32.mrb[10].mxu1  ;;  %v1110_v35 = vadd.f32 %v1109_v19, %v1108_v30 }
 0x121   : > { %v1604_v43 = vpop.f32.mrb[11].mxu0  ;;  %1092 = vst.msk [vmem:[%s1990_s29 + $0x44] sm:$0xf] %vm1074_vm2, %v1557_v36  ;;  %v1652_v48 = vpop.f32.mrb[11].mxu1  ;;  %v1214_v28 = vsel %vm292_vm0, %v1182_v10, 0.0  ;;  %v341_v36 = vld [vmem:[#allocation2 + $0x40] sm:$0xff] }
 0x122   : > { %v850_v46 = vadd.f32 %v1602_v38, %v337_v34  ;;  %v1605_v47 = vadd.f32 %v1604_v43, %v1603_v39  ;;  %v866_v50 = vadd.f32 %v1650_v44, %v353_v40  ;;  %v1653_v51 = vadd.f32 %v1652_v48, %v1651_v45  ;;  %v357_v43 = vld [vmem:[#allocation2 + $0xc0] sm:$0xff]  ;;  %v342_v48 = vld [vmem:[#allocation2 + $0x48] sm:$0xff]  ;;  %v359_v30 = vld [vmem:[#allocation2 + $0xd0] sm:$0xff] }
 0x123   : > { %v916_v49 = vld [vmem:[#allocation2 + $0x10] sm:$0xff]  ;;  %v1213_v38 = vsel %vm292_vm0, %v1181_v15, 0.0 }
 0x124   : > { %v1542_v52 = vpack.c.bf16 %v916_v49, %v916_v49  ;;  %883 = vst.msk [vmem:[#allocation2 + $0x20] sm:$0xff] %vm292_vm0, %v850_v46  ;;  %v851_v53 = vadd.f32 %v1605_v47, %v338_v42  ;;  %v2107_v54 = vld [vmem:[#allocation2 + $0x90] sm:$0xff]  ;;  %899 = vst.msk [vmem:[#allocation2 + $0xa0] sm:$0xff] %vm292_vm0, %v866_v50  ;;  %v867_v3 = vadd.f32 %v1653_v51, %v354_v57  ;;  %v1111_v31 = vsel %vm292_vm0, %v916_v49, 0.0 }
 0x125   : > { %v1558_v56 = vpack.c.bf16 %v2107_v54, %v2107_v54  ;;  %v1183_v20 = vmul.f32 %v916_v49, %v916_v49  ;;  %v1215_v45 = vadd.f32 %v1214_v28, %v1213_v38  ;;  %v1112_v46 = vadd.f32 %v1111_v31, %v1110_v35 }
 0x126   : > { %v2109_v55 = vld [vmem:[#allocation2 + $0x18] sm:$0xff]  ;;  %1077 = vst.msk [vmem:[%s1990_s29 + $0x8] sm:$0xf] %vm1074_vm2, %v1542_v52  ;;  %v1606_v59 = vpop.f32.mrb[12].mxu0  ;;  %v1654_v0 = vpop.f32.mrb[12].mxu1 }
 0x127   : > { %v1543_v58 = vpack.c.bf16 %v2109_v55, %v2109_v55  ;;  %884 = vst.msk [vmem:[#allocation2 + $0x28] sm:$0xff] %vm292_vm0, %v851_v53  ;;  %v2119_v60 = vld [vmem:[#allocation2 + $0x98] sm:$0xff]  ;;  %v1607_v62 = vpop.f32.mrb[13].mxu0  ;;  %v1655_v5 = vpop.f32.mrb[13].mxu1  ;;  %900 = vst.msk [vmem:[#allocation2 + $0xa8] sm:$0xff] %vm292_vm0, %v867_v3  ;;  %v1216_v39 = vsel %vm292_vm0, %v1183_v20, 0.0  ;;  %v1184_v40 = vmul.f32 %v2109_v55, %v2109_v55 }
 0x128   : > { %1093 = vst.msk [vmem:[%s1990_s29 + $0x48] sm:$0xf] %vm1074_vm2, %v1558_v56  ;;  %v1559_v63 = vpack.c.bf16 %v2119_v60, %v2119_v60  ;;  %v1608_v1 = vadd.f32 %v1607_v62, %v1606_v59  ;;  %v1609_v2 = vpop.f32.mrb[14].mxu0  ;;  %v1656_v8 = vadd.f32 %v1655_v5, %v1654_v0  ;;  %v1657_v9 = vpop.f32.mrb[14].mxu1  ;;  %v1113_v47 = vsel %vm292_vm0, %v2109_v55, 0.0 }
 0x129   : > { %1078 = vst.msk [vmem:[%s1990_s29 + $0xc] sm:$0xf] %vm1074_vm2, %v1543_v58  ;;  %v1610_v7 = vpop.f32.mrb[15].mxu0  ;;  %v1658_v14 = vpop.f32.mrb[15].mxu1  ;;  %v358_v58 = vld [vmem:[#allocation2 + $0xc8] sm:$0xff]  ;;  %v1217_v62 = vadd.f32 %v1216_v39, %v1215_v45  ;;  %v360_v39 = vld [vmem:[#allocation2 + $0xd8] sm:$0xff] }
 0x12a   : > { %1094 = vst.msk [vmem:[%s1990_s29 + $0x4c] sm:$0xf] %vm1074_vm2, %v1559_v63  ;;  %v852_v11 = vadd.f32 %v1608_v1, %v339_v61  ;;  %v1611_v12 = vadd.f32 %v1610_v7, %v1609_v2  ;;  %v868_v17 = vadd.f32 %v1656_v8, %v355_v4  ;;  %v1659_v18 = vadd.f32 %v1658_v14, %v1657_v9 }
 0x12b   : > { %v918_v16 = vld [vmem:[#allocation2 + $0x20] sm:$0xff]  ;;  %v1218_v1 = vsel %vm292_vm0, %v1184_v40, 0.0 }
 0x12c   : > { %v1544_v21 = vpack.c.bf16 %v918_v16, %v918_v16  ;;  %885 = vst.msk [vmem:[#allocation2 + $0x30] sm:$0xff] %vm292_vm0, %v852_v11  ;;  %v853_v23 = vadd.f32 %v1611_v12, %v340_v6  ;;  %v2137_v24 = vld [vmem:[#allocation2 + $0xa0] sm:$0xff]  ;;  %901 = vst.msk [vmem:[#allocation2 + $0xb0] sm:$0xff] %vm292_vm0, %v868_v17  ;;  %v869_v29 = vadd.f32 %v1659_v18, %v356_v13  ;;  %v1115_v2 = vsel %vm292_vm0, %v918_v16, 0.0  ;;  %v343_v17 = vld [vmem:[#allocation2 + $0x50] sm:$0xff] }
 0x12d   : > { %v1560_v26 = vpack.c.bf16 %v2137_v24, %v2137_v24  ;;  %v1185_v53 = vmul.f32 %v918_v16, %v918_v16  ;;  %v1114_v6 = vadd.f32 %v1113_v47, %v1112_v46  ;;  %v1219_v15 = vadd.f32 %v1218_v1, %v1217_v62 }
 0x12e   : > { %v2139_v25 = vld [vmem:[#allocation2 + $0x28] sm:$0xff]  ;;  %1079 = vst.msk [vmem:[%s1990_s29 + $0x10] sm:$0xf] %vm1074_vm2, %v1544_v21  ;;  %v1612_v34 = vpop.f32.mrb[16].mxu0  ;;  %v1660_v22 = vpop.f32.mrb[16].mxu1 }
 0x12f   : > { %v1545_v32 = vpack.c.bf16 %v2139_v25, %v2139_v25  ;;  %886 = vst.msk [vmem:[#allocation2 + $0x38] sm:$0xff] %vm292_vm0, %v853_v23  ;;  %v1613_v37 = vpop.f32.mrb[17].mxu0  ;;  %902 = vst.msk [vmem:[#allocation2 + $0xb8] sm:$0xff] %vm292_vm0, %v869_v29  ;;  %v1661_v44 = vpop.f32.mrb[17].mxu1  ;;  %v2164_v52 = vld [vmem:[#allocation2 + $0xa8] sm:$0xff]  ;;  %v1220_v10 = vsel %vm292_vm0, %v1185_v53, 0.0  ;;  %v1186_v11 = vmul.f32 %v2139_v25, %v2139_v25  ;;  %v1116_v16 = vadd.f32 %v1115_v2, %v1114_v6 }
 0x130   : > { %1095 = vst.msk [vmem:[%s1990_s29 + $0x50] sm:$0xf] %vm1074_vm2, %v1560_v26  ;;  %v1614_v41 = vadd.f32 %v1613_v37, %v1612_v34  ;;  %v1615_v42 = vpop.f32.mrb[18].mxu0  ;;  %v1662_v50 = vadd.f32 %v1661_v44, %v1660_v22  ;;  %v1663_v51 = vpop.f32.mrb[18].mxu1  ;;  %v1561_v61 = vpack.c.bf16 %v2164_v52, %v2164_v52  ;;  %v1117_v21 = vsel %vm292_vm0, %v2139_v25, 0.0 }
 0x131   : > { %1080 = vst.msk [vmem:[%s1990_s29 + $0x14] sm:$0xf] %vm1074_vm2, %v1545_v32  ;;  %v1616_v49 = vpop.f32.mrb[19].mxu0  ;;  %v1664_v59 = vpop.f32.mrb[19].mxu1  ;;  %v1221_v31 = vadd.f32 %v1220_v10, %v1219_v15  ;;  %v344_v32 = vld [vmem:[#allocation2 + $0x58] sm:$0xff]  ;;  %v1222_v37 = vsel %vm292_vm0, %v1186_v11, 0.0 }
 0x132   : > { %v854_v56 = vadd.f32 %v1614_v41, %v341_v36  ;;  %v1617_v57 = vadd.f32 %v1616_v49, %v1615_v42  ;;  %v870_v0 = vadd.f32 %v1662_v50, %v357_v43  ;;  %v1665_v55 = vadd.f32 %v1664_v59, %v1663_v51  ;;  %1096 = vst.msk [vmem:[%s1990_s29 + $0x54] sm:$0xf] %vm1074_vm2, %v1561_v61 }
 0x133   : > { %v920_v63 = vld [vmem:[#allocation2 + $0x30] sm:$0xff]  ;;  %v1118_v41 = vadd.f32 %v1117_v21, %v1116_v16  ;;  %v1223_v50 = vadd.f32 %v1222_v37, %v1221_v31  ;;  %v362_v21 = vld [vmem:[#allocation2 + $0xe8] sm:$0xff] }
 0x134   : > { %v1546_v3 = vpack.c.bf16 %v920_v63, %v920_v63  ;;  %887 = vst.msk [vmem:[#allocation2 + $0x40] sm:$0xff] %vm292_vm0, %v854_v56  ;;  %v855_v4 = vadd.f32 %v1617_v57, %v342_v48  ;;  %v2171_v5 = vld [vmem:[#allocation2 + $0xb0] sm:$0xff]  ;;  %903 = vst.msk [vmem:[#allocation2 + $0xc0] sm:$0xff] %vm292_vm0, %v870_v0  ;;  %v871_v8 = vadd.f32 %v1665_v55, %v358_v58  ;;  %v1119_v22 = vsel %vm292_vm0, %v920_v63, 0.0  ;;  %v345_v55 = vld [vmem:[#allocation2 + $0x60] sm:$0xff] }
 0x135   : > { %v1562_v9 = vpack.c.bf16 %v2171_v5, %v2171_v5  ;;  %v1187_v23 = vmul.f32 %v920_v63, %v920_v63  ;;  %v1120_v51 = vadd.f32 %v1119_v22, %v1118_v41 }
 0x136   : > { %v921_v7 = vld [vmem:[#allocation2 + $0x38] sm:$0xff]  ;;  %1081 = vst.msk [vmem:[%s1990_s29 + $0x18] sm:$0xf] %vm1074_vm2, %v1546_v3  ;;  %v1618_v13 = vpop.f32.mrb[20].mxu0  ;;  %v1666_v19 = vpop.f32.mrb[20].mxu1 }
 0x137   : > { %v1547_v12 = vpack.c.bf16 %v921_v7, %v921_v7  ;;  %888 = vst.msk [vmem:[#allocation2 + $0x48] sm:$0xff] %vm292_vm0, %v855_v4  ;;  %v2184_v14 = vld [vmem:[#allocation2 + $0xb8] sm:$0xff]  ;;  %v1619_v18 = vpop.f32.mrb[21].mxu0  ;;  %904 = vst.msk [vmem:[#allocation2 + $0xc8] sm:$0xff] %vm292_vm0, %v871_v8  ;;  %v1667_v28 = vpop.f32.mrb[21].mxu1  ;;  %v1224_v45 = vsel %vm292_vm0, %v1187_v23, 0.0  ;;  %v1188_v46 = vmul.f32 %v921_v7, %v921_v7 }
 0x138   : > { %v1563_v20 = vpack.c.bf16 %v2184_v14, %v2184_v14  ;;  %1097 = vst.msk [vmem:[%s1990_s29 + $0x58] sm:$0xf] %vm1074_vm2, %v1562_v9  ;;  %v1620_v26 = vadd.f32 %v1619_v18, %v1618_v13  ;;  %v1621_v29 = vpop.f32.mrb[22].mxu0  ;;  %v1668_v35 = vadd.f32 %v1667_v28, %v1666_v19  ;;  %v1669_v36 = vpop.f32.mrb[22].mxu1  ;;  %v1121_v58 = vsel %vm292_vm0, %v921_v7, 0.0  ;;  %v361_v9 = vld [vmem:[#allocation2 + $0xe0] sm:$0xff] }
 0x139   : > { %1082 = vst.msk [vmem:[%s1990_s29 + $0x1c] sm:$0xf] %vm1074_vm2, %v1547_v12  ;;  %v1622_v34 = vpop.f32.mrb[23].mxu0  ;;  %v1670_v40 = vpop.f32.mrb[23].mxu1  ;;  %v1225_v0 = vadd.f32 %v1224_v45, %v1223_v50  ;;  %v1226_v4 = vsel %vm292_vm0, %v1188_v46, 0.0  ;;  %v1122_v11 = vadd.f32 %v1121_v58, %v1120_v51  ;;  %v346_v12 = vld [vmem:[#allocation2 + $0x68] sm:$0xff] }
 0x13a   : > { %1098 = vst.msk [vmem:[%s1990_s29 + $0x5c] sm:$0xf] %vm1074_vm2, %v1563_v20  ;;  %v856_v38 = vadd.f32 %v1620_v26, %v343_v17  ;;  %v1623_v25 = vadd.f32 %v1622_v34, %v1621_v29  ;;  %v872_v43 = vadd.f32 %v1668_v35, %v359_v30  ;;  %v1671_v44 = vadd.f32 %v1670_v40, %v1669_v36  ;;  %v363_v58 = vld [vmem:[#allocation2 + $0xf0] sm:$0xff] }
 0x13b   : > { %v922_v42 = vld [vmem:[#allocation2 + $0x40] sm:$0xff]  ;;  %v1227_v26 = vadd.f32 %v1226_v4, %v1225_v0  ;;  %v348_v0 = vld [vmem:[#allocation2 + $0x78] sm:$0xff] }
 0x13c   : > { %v1548_v47 = vpack.c.bf16 %v922_v42, %v922_v42  ;;  %889 = vst.msk [vmem:[#allocation2 + $0x50] sm:$0xff] %vm292_vm0, %v856_v38  ;;  %v857_v48 = vadd.f32 %v1623_v25, %v344_v32  ;;  %v2201_v49 = vld [vmem:[#allocation2 + $0xc0] sm:$0xff]  ;;  %905 = vst.msk [vmem:[#allocation2 + $0xd0] sm:$0xff] %vm292_vm0, %v872_v43  ;;  %v873_v56 = vadd.f32 %v1671_v44, %v360_v39  ;;  %v1123_v6 = vsel %vm292_vm0, %v922_v42, 0.0 }
 0x13d   : > { %v1564_v57 = vpack.c.bf16 %v2201_v49, %v2201_v49  ;;  %v1189_v59 = vmul.f32 %v922_v42, %v922_v42  ;;  %v1124_v29 = vadd.f32 %v1123_v6, %v1122_v11 }
 0x13e   : > { %v923_v53 = vld [vmem:[#allocation2 + $0x48] sm:$0xff]  ;;  %1083 = vst.msk [vmem:[%s1990_s29 + $0x20] sm:$0xf] %vm1074_vm2, %v1548_v47  ;;  %v1624_v62 = vpop.f32.mrb[24].mxu0  ;;  %v1672_v2 = vpop.f32.mrb[24].mxu1  ;;  %v347_v47 = vld [vmem:[#allocation2 + $0x70] sm:$0xff] }
 0x13f   : > { %v1549_v61 = vpack.c.bf16 %v923_v53, %v923_v53  ;;  %890 = vst.msk [vmem:[#allocation2 + $0x58] sm:$0xff] %vm292_vm0, %v857_v48  ;;  %v2210_v63 = vld [vmem:[#allocation2 + $0xc8] sm:$0xff]  ;;  %v1625_v1 = vpop.f32.mrb[25].mxu0  ;;  %906 = vst.msk [vmem:[#allocation2 + $0xd8] sm:$0xff] %vm292_vm0, %v873_v56  ;;  %v1673_v10 = vpop.f32.mrb[25].mxu1  ;;  %v1228_v17 = vsel %vm292_vm0, %v1189_v59, 0.0  ;;  %v1190_v18 = vmul.f32 %v923_v53, %v923_v53 }
 0x140   : > { %v1565_v3 = vpack.c.bf16 %v2210_v63, %v2210_v63  ;;  %1099 = vst.msk [vmem:[%s1990_s29 + $0x60] sm:$0xf] %vm1074_vm2, %v1564_v57  ;;  %v1626_v7 = vadd.f32 %v1625_v1, %v1624_v62  ;;  %v1627_v8 = vpop.f32.mrb[26].mxu0  ;;  %v1674_v15 = vadd.f32 %v1673_v10, %v1672_v2  ;;  %v1675_v16 = vpop.f32.mrb[26].mxu1  ;;  %v1125_v32 = vsel %vm292_vm0, %v923_v53, 0.0 }
 0x141   : > { %1084 = vst.msk [vmem:[%s1990_s29 + $0x24] sm:$0xf] %vm1074_vm2, %v1549_v61  ;;  %v1628_v13 = vpop.f32.mrb[27].mxu0  ;;  %v1676_v23 = vpop.f32.mrb[27].mxu1  ;;  %v1229_v22 = vadd.f32 %v1228_v17, %v1227_v26  ;;  %v1230_v40 = vsel %vm292_vm0, %v1190_v18, 0.0  ;;  %v1126_v45 = vadd.f32 %v1125_v32, %v1124_v29 }
 0x142   : > { %1100 = vst.msk [vmem:[%s1990_s29 + $0x64] sm:$0xf] %vm1074_vm2, %v1565_v3  ;;  %v858_v19 = vadd.f32 %v1626_v7, %v345_v55  ;;  %v1629_v20 = vadd.f32 %v1628_v13, %v1627_v8  ;;  %v874_v28 = vadd.f32 %v1674_v15, %v361_v9  ;;  %v1677_v31 = vadd.f32 %v1676_v23, %v1675_v16  ;;  %v364_v7 = vld [vmem:[#allocation2 + $0xf8] sm:$0xff] }
 0x143   : > { %v924_v30 = vld [vmem:[#allocation2 + $0x50] sm:$0xff]  ;;  %v1231_v61 = vadd.f32 %v1230_v40, %v1229_v22 }
 0x144   : > { %v1550_v34 = vpack.c.bf16 %v924_v30, %v924_v30  ;;  %v1191_v35 = vmul.f32 %v924_v30, %v924_v30  ;;  %891 = vst.msk [vmem:[#allocation2 + $0x60] sm:$0xff] %vm292_vm0, %v858_v19  ;;  %v859_v36 = vadd.f32 %v1629_v20, %v346_v12  ;;  %v2226_v37 = vld [vmem:[#allocation2 + $0xd0] sm:$0xff]  ;;  %907 = vst.msk [vmem:[#allocation2 + $0xe0] sm:$0xff] %vm292_vm0, %v874_v28  ;;  %v1127_v41 = vsel %vm292_vm0, %v924_v30, 0.0 }
 0x145   : > { %v875_v25 = vadd.f32 %v1677_v31, %v362_v21  ;;  %v1566_v39 = vpack.c.bf16 %v2226_v37, %v2226_v37  ;;  %v1128_v62 = vadd.f32 %v1127_v41, %v1126_v45  ;;  %v1197_v45 = vmul.f32 %v2083_v27, %v2083_v27 }
 0x146   : > { %v925_v38 = vld [vmem:[#allocation2 + $0x58] sm:$0xff]  ;;  %1085 = vst.msk [vmem:[%s1990_s29 + $0x28] sm:$0xf] %vm1074_vm2, %v1550_v34  ;;  %v1630_v43 = vpop.f32.mrb[28].mxu0  ;;  %v1678_v50 = vpop.f32.mrb[28].mxu1  ;;  %v1232_v53 = vsel %vm292_vm0, %v1191_v35, 0.0 }
 0x147   : > { %v1551_v42 = vpack.c.bf16 %v925_v38, %v925_v38  ;;  %892 = vst.msk [vmem:[#allocation2 + $0x68] sm:$0xff] %vm292_vm0, %v859_v36  ;;  %v2236_v44 = vld [vmem:[#allocation2 + $0xd8] sm:$0xff]  ;;  %v1192_v46 = vmul.f32 %v925_v38, %v925_v38  ;;  %v1631_v48 = vpop.f32.mrb[29].mxu0  ;;  %908 = vst.msk [vmem:[#allocation2 + $0xe8] sm:$0xff] %vm292_vm0, %v875_v25  ;;  %v1679_v59 = vpop.f32.mrb[29].mxu1  ;;  %v1129_v3 = vsel %vm292_vm0, %v925_v38, 0.0  ;;  %v1233_v9 = vadd.f32 %v1232_v53, %v1231_v61 }
 0x148   : > { %v1567_v51 = vpack.c.bf16 %v2236_v44, %v2236_v44  ;;  %1101 = vst.msk [vmem:[%s1990_s29 + $0x68] sm:$0xf] %vm1074_vm2, %v1566_v39  ;;  %v1632_v56 = vadd.f32 %v1631_v48, %v1630_v43  ;;  %v1633_v57 = vpop.f32.mrb[30].mxu0  ;;  %v1680_v1 = vadd.f32 %v1679_v59, %v1678_v50  ;;  %v1681_v2 = vpop.f32.mrb[30].mxu1  ;;  %v1130_v20 = vadd.f32 %v1129_v3, %v1128_v62 }
 0x149   : > { %1086 = vst.msk [vmem:[%s1990_s29 + $0x2c] sm:$0xf] %vm1074_vm2, %v1551_v42  ;;  %v1634_v55 = vpop.f32.mrb[31].mxu0  ;;  %v1682_v8 = vpop.f32.mrb[31].mxu1  ;;  %v1234_v10 = vsel %vm292_vm0, %v1192_v46, 0.0 }
 0x14a   : > { %1102 = vst.msk [vmem:[%s1990_s29 + $0x6c] sm:$0xf] %vm1074_vm2, %v1567_v51  ;;  %v860_v4 = vadd.f32 %v1632_v56, %v347_v47  ;;  %v1635_v6 = vadd.f32 %v1634_v55, %v1633_v57  ;;  %v876_v12 = vadd.f32 %v1680_v1, %v363_v58  ;;  %v1683_v13 = vadd.f32 %v1682_v8, %v1681_v2 }
 0x14b   : > { %v926_v11 = vld [vmem:[#allocation2 + $0x60] sm:$0xff]  ;;  %v1235_v32 = vadd.f32 %v1234_v10, %v1233_v9  ;;  %v1198_v55 = vmul.f32 %v2095_v33, %v2095_v33  ;;  %v1143_v10 = vsel %vm292_vm0, %v2107_v54, 0.0 }
 0x14c   : > { %v1552_v15 = vpack.c.bf16 %v926_v11, %v926_v11  ;;  %v1131_v16 = vsel %vm292_vm0, %v926_v11, 0.0  ;;  %v1193_v17 = vmul.f32 %v926_v11, %v926_v11  ;;  %893 = vst.msk [vmem:[#allocation2 + $0x70] sm:$0xff] %vm292_vm0, %v860_v4  ;;  %v861_v18 = vadd.f32 %v1635_v6, %v348_v0  ;;  %v2252_v19 = vld [vmem:[#allocation2 + $0xe0] sm:$0xff]  ;;  %909 = vst.msk [vmem:[#allocation2 + $0xf0] sm:$0xff] %vm292_vm0, %v876_v12 }
 0x14d   : > { %v877_v23 = vadd.f32 %v1683_v13, %v364_v7  ;;  %v1568_v26 = vpack.c.bf16 %v2252_v19, %v2252_v19  ;;  %v1132_v34 = vadd.f32 %v1131_v16, %v1130_v20  ;;  %v1139_v0 = vsel %vm292_vm0, %v2083_v27, 0.0 }
 0x14e   : > { %v927_v21 = vld [vmem:[#allocation2 + $0x68] sm:$0xff]  ;;  %1087 = vst.msk [vmem:[%s1990_s29 + $0x30] sm:$0xf] %vm1074_vm2, %v1552_v15  ;;  %v1236_v29 = vsel %vm292_vm0, %v1193_v17, 0.0  ;;  %v1244_v4 = vsel %vm292_vm0, %v1197_v45, 0.0  ;;  %v1141_v6 = vsel %vm292_vm0, %v2095_v33, 0.0  ;;  %v1199_v7 = vmul.f32 %v2107_v54, %v2107_v54 }
 0x14f   : > { %v1553_v30 = vpack.c.bf16 %v927_v21, %v927_v21  ;;  %v1194_v28 = vmul.f32 %v927_v21, %v927_v21  ;;  %894 = vst.msk [vmem:[#allocation2 + $0x78] sm:$0xff] %vm292_vm0, %v861_v18  ;;  %v2261_v31 = vld [vmem:[#allocation2 + $0xe8] sm:$0xff]  ;;  %910 = vst.msk [vmem:[#allocation2 + $0xf8] sm:$0xff] %vm292_vm0, %v877_v23  ;;  %v1133_v36 = vsel %vm292_vm0, %v927_v21, 0.0  ;;  %v1237_v22 = vadd.f32 %v1236_v29, %v1235_v32 }
 0x150   : > { %v1569_v35 = vpack.c.bf16 %v2261_v31, %v2261_v31  ;;  %1103 = vst.msk [vmem:[%s1990_s29 + $0x70] sm:$0xf] %vm1074_vm2, %v1568_v26  ;;  %v1134_v25 = vadd.f32 %v1133_v36, %v1132_v34  ;;  %v1246_v9 = vsel %vm292_vm0, %v1198_v55, 0.0  ;;  %v1200_v11 = vmul.f32 %v2119_v60, %v2119_v60 }
 0x151   : > { %1088 = vst.msk [vmem:[%s1990_s29 + $0x34] sm:$0xf] %vm1074_vm2, %v1553_v30  ;;  %v1238_v38 = vsel %vm292_vm0, %v1194_v28, 0.0  ;;  %v1248_v15 = vsel %vm292_vm0, %v1199_v7, 0.0  ;;  %v1145_v33 = vsel %vm292_vm0, %v2119_v60, 0.0  ;;  %v1201_v16 = vmul.f32 %v2137_v24, %v2137_v24 }
 0x152   : > { %1104 = vst.msk [vmem:[%s1990_s29 + $0x74] sm:$0xf] %vm1074_vm2, %v1569_v35  ;;  %v1239_v46 = vadd.f32 %v1238_v38, %v1237_v22  ;;  %v1147_v20 = vsel %vm292_vm0, %v2137_v24, 0.0  ;;  %v1202_v54 = vmul.f32 %v2164_v52, %v2164_v52  ;;  %v1250_v21 = vsel %vm292_vm0, %v1200_v11, 0.0 }
 0x153   : > { %v928_v39 = vld [vmem:[#allocation2 + $0x70] sm:$0xff]  ;;  %v1149_v29 = vsel %vm292_vm0, %v2164_v52, 0.0  ;;  %v1203_v60 = vmul.f32 %v2171_v5, %v2171_v5  ;;  %v1252_v30 = vsel %vm292_vm0, %v1201_v16, 0.0  ;;  %v1151_v24 = vsel %vm292_vm0, %v2171_v5, 0.0 }
 0x154   : > { %v1554_v40 = vpack.c.bf16 %v928_v39, %v928_v39  ;;  %v1135_v41 = vsel %vm292_vm0, %v928_v39, 0.0  ;;  %v1195_v42 = vmul.f32 %v928_v39, %v928_v39  ;;  %v2275_v43 = vld [vmem:[#allocation2 + $0xf0] sm:$0xff]  ;;  %v1204_v34 = vmul.f32 %v2184_v14, %v2184_v14 }
 0x155   : > { %v1136_v47 = vadd.f32 %v1135_v41, %v1134_v25  ;;  %v1570_v50 = vpack.c.bf16 %v2275_v43, %v2275_v43  ;;  %v1254_v35 = vsel %vm292_vm0, %v1202_v54, 0.0  ;;  %v1153_v52 = vsel %vm292_vm0, %v2184_v14, 0.0 }
 0x156   : > { %v929_v48 = vld [vmem:[#allocation2 + $0x78] sm:$0xff]  ;;  %1089 = vst.msk [vmem:[%s1990_s29 + $0x38] sm:$0xf] %vm1074_vm2, %v1554_v40  ;;  %v1240_v51 = vsel %vm292_vm0, %v1195_v42, 0.0  ;;  %v1205_v38 = vmul.f32 %v2201_v49, %v2201_v49  ;;  %v1256_v25 = vsel %vm292_vm0, %v1203_v60, 0.0  ;;  %v1155_v5 = vsel %vm292_vm0, %v2201_v49, 0.0 }
 0x157   : > { %v1555_v53 = vpack.c.bf16 %v929_v48, %v929_v48  ;;  %v1137_v56 = vsel %vm292_vm0, %v929_v48, 0.0  ;;  %v1196_v57 = vmul.f32 %v929_v48, %v929_v48  ;;  %v2285_v58 = vld [vmem:[#allocation2 + $0xf8] sm:$0xff]  ;;  %v1241_v59 = vadd.f32 %v1240_v51, %v1239_v46  ;;  %1105 = vst.msk [vmem:[%s1990_s29 + $0x78] sm:$0xf] %vm1074_vm2, %v1570_v50 }
 0x158   : > { %v1138_v61 = vadd.f32 %v1137_v56, %v1136_v47  ;;  %v1571_v62 = vpack.c.bf16 %v2285_v58, %v2285_v58  ;;  %v1206_v41 = vmul.f32 %v2210_v63, %v2210_v63  ;;  %v1258_v42 = vsel %vm292_vm0, %v1204_v34, 0.0 }
 0x159   : > { %1090 = vst.msk [vmem:[%s1990_s29 + $0x3c] sm:$0xf] %vm1074_vm2, %v1555_v53  ;;  %v1242_v1 = vsel %vm292_vm0, %v1196_v57, 0.0  ;;  %v1157_v14 = vsel %vm292_vm0, %v2210_v63, 0.0  ;;  %v1207_v47 = vmul.f32 %v2226_v37, %v2226_v37  ;;  %v1260_v48 = vsel %vm292_vm0, %v1205_v38, 0.0 }
 0x15a   : > { %v1140_v2 = vadd.f32 %v1139_v0, %v1138_v61  ;;  %v1243_v3 = vadd.f32 %v1242_v1, %v1241_v59  ;;  %1106 = vst.msk [vmem:[%s1990_s29 + $0x7c] sm:$0xf] %vm1074_vm2, %v1571_v62  ;;  %v1159_v49 = vsel %vm292_vm0, %v2226_v37, 0.0  ;;  %v1208_v53 = vmul.f32 %v2236_v44, %v2236_v44  ;;  %s1305_s29 = sshll.u32 %s1890_s26, 4  ;;  %s1306_s29 = int_to_ptr.vmem [resolvable:$true] %s1305_s29 }
 0x15b   : > { %v1262_v56 = vsel %vm292_vm0, %v1206_v41, 0.0  ;;  %v1161_v63 = vsel %vm292_vm0, %v2236_v44, 0.0  ;;  %v1209_v61 = vmul.f32 %v2252_v19, %v2252_v19  ;;  %v1264_v62 = vsel %vm292_vm0, %v1207_v47, 0.0  ;;  %s1804_s23 = scalar_lea.vmem %s1306_s29, 16  ;;  %s1810_s18 = scalar_lea.vmem %s1306_s29, 32 }
 0x15c   : > { %v1245_v27 = vadd.f32 %v1244_v4, %v1243_v3  ;;  %v1142_v8 = vadd.f32 %v1141_v6, %v1140_v2  ;;  %v1163_v37 = vsel %vm292_vm0, %v2252_v19, 0.0  ;;  %v1210_v1 = vmul.f32 %v2261_v31, %v2261_v31  ;;  %p1805_p7 = scmp.ne.s32.totalorder %s1306_s29, %s1804_s23  ;;  %p1811_p10 = scmp.lt.s32.totalorder %s1306_s29, %s1306_s29 }
 0x15d   : > { %v1211_v2 = vmul.f32 %v2275_v43, %v2275_v43  ;;  %v1266_v3 = vsel %vm292_vm0, %v1208_v53, 0.0  ;;  %v1165_v6 = vsel %vm292_vm0, %v2261_v31, 0.0  ;;  %v1167_v7 = vsel %vm292_vm0, %v2275_v43, 0.0  ;;  %p1812_p11 = scmp.lt.s32.totalorder %s1810_s18, %s1804_s23 }
 0x15e   : > { %v1144_v12 = vadd.f32 %v1143_v10, %v1142_v8  ;;  %v1247_v13 = vadd.f32 %v1246_v9, %v1245_v27  ;;  %v1268_v27 = vsel %vm292_vm0, %v1209_v61, 0.0  ;;  %v1212_v9 = vmul.f32 %v2285_v58, %v2285_v58  ;;  %p1806_p8 = pnand %p1805_p7, %p2376_p6 }
 0x15f   : > { %v1270_v10 = vsel %vm292_vm0, %v1210_v1, 0.0  ;;  %v1272_v11 = vsel %vm292_vm0, %v1211_v2, 0.0  ;;  %p1813_p12 = por %p1812_p11, %p1811_p10 }
 0x160   : > { %v1146_v17 = vadd.f32 %v1145_v33, %v1144_v12  ;;  %v1249_v18 = vadd.f32 %v1248_v15, %v1247_v13  ;;  %v1169_v15 = vsel %vm292_vm0, %v2285_v58, 0.0  ;;  %v1274_v43 = vsel %vm292_vm0, %v1212_v9, 0.0  ;;  %p1807_p9 = pneg %p1806_p8 }
 0x162   : > { %v1148_v23 = vadd.f32 %v1147_v20, %v1146_v17  ;;  %v1251_v26 = vadd.f32 %v1250_v21, %v1249_v18  ;;  %p1814_p13 = pnand %p1813_p12, %p1807_p9 }
 0x164   : > { %v1150_v28 = vadd.f32 %v1149_v29, %v1148_v23  ;;  %v1253_v32 = vadd.f32 %v1252_v30, %v1251_v26  ;;  %v1107_v30 = vld [vmem:[#allocation3] sm:$0x1] }
 0x166   : > { %v1152_v36 = vadd.f32 %v1151_v24, %v1150_v28  ;;  %v1255_v22 = vadd.f32 %v1254_v35, %v1253_v32  ;;  %v1180_v32 = vld [vmem:[#allocation5] sm:$0x1] }
 0x168   : > { %v1154_v39 = vadd.f32 %v1153_v52, %v1152_v36  ;;  %v1257_v40 = vadd.f32 %v1256_v25, %v1255_v22 }
 0x16a   : > { %v1156_v45 = vadd.f32 %v1155_v5, %v1154_v39  ;;  %v1259_v46 = vadd.f32 %v1258_v42, %v1257_v40 }
 0x16c   : > { %v1158_v50 = vadd.f32 %v1157_v14, %v1156_v45  ;;  %v1261_v51 = vadd.f32 %v1260_v48, %v1259_v46 }
 0x16e   : > { %v1160_v57 = vadd.f32 %v1159_v49, %v1158_v50  ;;  %v1263_v59 = vadd.f32 %v1262_v56, %v1261_v51 }
 0x170   : > { %v1162_v0 = vadd.f32 %v1161_v63, %v1160_v57  ;;  %v1265_v55 = vadd.f32 %v1264_v62, %v1263_v59 }
 0x172   : > { %v1164_v4 = vadd.f32 %v1163_v37, %v1162_v0  ;;  %v1267_v44 = vadd.f32 %v1266_v3, %v1265_v55 }
 0x174   : > { %v1166_v8 = vadd.f32 %v1165_v6, %v1164_v4  ;;  %v1269_v19 = vadd.f32 %v1268_v27, %v1267_v44 }
 0x176   : > { %v1168_v12 = vadd.f32 %v1167_v7, %v1166_v8  ;;  %v1271_v13 = vadd.f32 %v1270_v10, %v1269_v19 }
 0x178   : > { %v1170_v31 = vadd.f32 %v1169_v15, %v1168_v12  ;;  %v1273_v33 = vadd.f32 %v1272_v11, %v1271_v13 }
 0x17a   : > { %v1171_v16 = vrot.slane %v1170_v31, 4  ;;  %v1275_v17 = vadd.f32 %v1274_v43, %v1273_v33 }
 0x17c   : > { %v1172_v18 = vadd.f32 %v1171_v16, %v1170_v31  ;;  %v1276_v20 = vrot.slane %v1275_v17, 4 }
 0x17e   : > { %v1173_v54 = vrot.slane %v1172_v18, 2  ;;  %v1277_v21 = vadd.f32 %v1276_v20, %v1275_v17 }
 0x180   : > { %v1174_v23 = vadd.f32 %v1173_v54, %v1172_v18  ;;  %v1278_v26 = vrot.slane %v1277_v21, 2 }
 0x182   : > { %v1175_v29 = vrot.slane %v1174_v23, 1  ;;  %v1279_v60 = vadd.f32 %v1278_v26, %v1277_v21 }
 0x184   : > { %v1176_v28 = vadd.f32 %v1175_v29, %v1174_v23  ;;  %v1280_v58 = vrot.slane %v1279_v60, 1 }
 0x186   : > { %v1177_v24 = vadd.f32 %v1176_v28, %v1107_v30  ;;  %v1281_v34 = vadd.f32 %v1280_v58, %v1279_v60 }
 0x188   : > { %1179 = vst.msk [vmem:[#allocation3] sm:$0x1] %vm1178_vm3, %v1177_v24  ;;  %v1282_v35 = vadd.f32 %v1281_v34, %v1180_v32 }
 0x189   : > { %1817 = shalt.err (!%p1814_p13)
}
 0x18a   : > { %s1818_s27 = scalar_lea.hbm %s2446_s3, 16 }
 0x18b   : > { %p1819_p0 = scmp.ne.s32.totalorder %s2446_s3, %s1818_s27  ;;  %p1824_p3 = scmp.lt.u32.totalorder %s1818_s27, %s2446_s3 }
 0x18d   : > { %p1820_p1 = pnand %p1819_p0, %p2376_p6 }
 0x18f   : > { %p1821_p2 = pneg %p1820_p1 }
 0x191   : > { %p1826_p4 = pnand %p1824_p3, %p1821_p2 }
 0x193   : > { %1829 = shalt.err (!%p1826_p4)
}
 0x194   : > { %1701 = dma.vmem_to_hbm [thread:$0]  (%p2376_p6), %s1306_s29, 16, %s2446_s3, [#allocation4]   ;;  %1283 = vst.msk [vmem:[#allocation5] sm:$0x1] %vm1178_vm3, %v1282_v35 }
 0x195   : > { %s1830_s9 = scalar_lea.vmem %s2381_s22, 16  ;;  %s1836_s10 = scalar_lea.vmem %s2381_s22, 32 }
 0x196   : > { %p1831_p5 = scmp.ne.s32.totalorder %s2381_s22, %s1830_s9  ;;  %p1837_p9 = scmp.lt.s32.totalorder %s2381_s22, %s2381_s22 }
 0x197   : > { %p1838_p10 = scmp.lt.s32.totalorder %s1836_s10, %s1830_s9 }
 0x198   : > { %p1832_p7 = pnand %p1831_p5, %p2376_p6 }
 0x199   : > { %p1839_p11 = por %p1838_p10, %p1837_p9 }
 0x19a   : > { %p1833_p8 = pneg %p1832_p7 }
 0x19c   : > { %p1840_p12 = pnand %p1839_p11, %p1833_p8 }
 0x19e   : > { %1843 = shalt.err (!%p1840_p12)
}
 0x19f   : > { %s1844_s13 = scalar_lea.hbm %s2447_s4, 16 }
 0x1a0   : > { %p1845_p13 = scmp.ne.s32.totalorder %s2447_s4, %s1844_s13  ;;  %p1850_p2 = scmp.lt.u32.totalorder %s1844_s13, %s2447_s4 }
 0x1a2   : > { %p1846_p0 = pnand %p1845_p13, %p2376_p6 }
 0x1a4   : > { %p1847_p1 = pneg %p1846_p0 }
 0x1a6   : > { %p1852_p3 = pnand %p1850_p2, %p1847_p1 }
 0x1a8   : > { %1855 = shalt.err (!%p1852_p3)
}
 0x1a9   : > { %1703 = dma.vmem_to_hbm [thread:$0]  (%p2376_p6), %s2381_s22, 16, %s2447_s4, [#allocation6]  }
 0x1aa   : > { %1869 = dma.done.wait (%p2376_p6), [#allocation4], 16  }
 0x1ab   : > { %1871 = vsyncadd (%p2376_p6), [#allocation4], 4294967280 }
 0x1ac   : > { %1873 = dma.done.wait (%p2376_p6), [#allocation6], 16  }
 0x1ad   : > { %1875 = vsyncadd (%p2376_p6), [#allocation6], 4294967280 }
 0x1ae PF: > { %s17_s17 = sadd.s32 1, %s1886_s17   ;;  %s2450_s15 = smov %s1882_s16 }
 0x1af   : > { %p14_p4 = scmp.ge.s32.totalorder %s17_s17, 10   ;;  %s2451_s16 = smov %s2453_s19 }
 0x1b1   :  { %16 = sbr.rel (!%p14_p4) target bundleno = 3 (0x3), region = 92 }
 0x1b8   :  { %1346 = vsyncpa [#allocation4], 1 }
 0x1b9   :  { %1348 = vsyncpa [#allocation4 + $0x1], 1 }
 0x1ba   :  { %1349 = vsyncpa [#allocation6], 1 }

</bundles_post_ra>
